<compile_context>
chip_gen: v5e
topology: v5e:2x2
jax: 0.10.0
libtpu: 0.0.40
codegen_flags: <defaults>
</compile_context>

<pallas_src>
import functools

import jax
import jax.numpy as jnp
from jax import lax
from jax.experimental import pallas as pl
from jax.experimental.pallas import tpu as pltpu


def _round_up(x, m):
    return ((x + m - 1) // m) * m


def _sse_kernel(gt_ref, pred_ref, out_ref, *, k_total, tile_k):
    """Accumulate per-row sum of squared errors, folded into 128-wide lane groups."""
    k = pl.program_id(1)

    @pl.when(k == 0)
    def _():
        out_ref[...] = jnp.zeros_like(out_ref)

    d = gt_ref[...].astype(jnp.float32) - pred_ref[...].astype(jnp.float32)

    # Mask the ragged tail tile in-kernel (only emitted if K % tile_k != 0),
    # instead of padding both inputs in HBM.
    if k_total % tile_k != 0:
        col = k * tile_k + lax.broadcasted_iota(jnp.int32, d.shape, 1)
        d = jnp.where(col < k_total, d, 0.0)

    d2 = d * d

    # Fold tile_k lanes into one 128-wide group with 128-aligned static slices:
    # pure lane-aligned VPU adds, no cross-lane reduce per grid step.
    acc = d2[:, :128]
    for g in range(1, tile_k // 128):
        acc = acc + d2[:, g * 128:(g + 1) * 128]
    out_ref[...] += acc


def _per_row_sse(gt_rk, pred_rk, *, max_tile_r=256, max_tile_k=1024,
                 vmem_budget_bytes=20 * 1024 * 1024):
    """gt_rk, pred_rk: (R, K) arrays. Returns (R,) float32 sums of squared errors."""
    R, K = gt_rk.shape
    itemsize = jnp.dtype(gt_rk.dtype).itemsize

    # Tile sizes: rows blocked to a multiple of 8, lanes a large multiple of
    # 128.  Keep double-buffered inputs (2 inputs x 2 buffers) under a VMEM
    # budget that is safe on every generation (v7x: 64 MiB physical,
    # 32 MiB scoped default).
    tile_r = min(_round_up(R, 8), max_tile_r)
    tile_k = min(_round_up(K, 128), max_tile_k)
    while tile_k > 128 and 2 * 2 * tile_r * tile_k * itemsize > vmem_budget_bytes:
        tile_k = _round_up(tile_k // 2, 128)

    grid = (pl.cdiv(R, tile_r), pl.cdiv(K, tile_k))

    kernel = functools.partial(_sse_kernel, k_total=K, tile_k=tile_k)

    cost = pl.CostEstimate(
        flops=3 * R * K,
        transcendentals=0,
        bytes_accessed=2 * R * K * itemsize + R * 128 * 4,
    )

    partial_sums = pl.pallas_call(
        kernel,
        out_shape=jax.ShapeDtypeStruct((R, 128), jnp.float32),
        grid_spec=pltpu.PrefetchScalarGridSpec(
            num_scalar_prefetch=0,
            grid=grid,
            in_specs=[
                pl.BlockSpec((tile_r, tile_k), lambda i, k: (i, k)),
                pl.BlockSpec((tile_r, tile_k), lambda i, k: (i, k)),
            ],
            out_specs=pl.BlockSpec((tile_r, 128), lambda i, k: (i, 0)),
        ),
        compiler_params=pltpu.CompilerParams(
            dimension_semantics=("parallel", "arbitrary"),
            vmem_limit_bytes=32 * 1024 * 1024,
        ),
        cost_estimate=cost,
    )(gt_rk, pred_rk)

    # Single cross-lane reduce in the epilogue (cheap, (R,128) -> (R,)).
    return jnp.sum(partial_sums, axis=-1)


@functools.partial(jax.jit, static_argnames=("is_reduce_channel",))
def rmse(gt, pred, is_reduce_channel=True):
    """Root-mean-square error, matching the PyTorch RootMeanSquareError module.

    gt, pred: (N, C, H, W) arrays (NCHW, like the PyTorch module).
    is_reduce_channel=True  -> scalar RMSE over all elements.
    is_reduce_channel=False -> (C,) RMSE reduced over dims (0, 2, 3).
    """
    N, C, H, W = gt.shape

    # Free contiguous reshape (no transpose, no HBM round trip).
    gt_rk = gt.reshape(N * C, H * W)
    pred_rk = pred.reshape(N * C, H * W)

    sse_rows = _per_row_sse(gt_rk, pred_rk)                     # (N*C,) float32
    sse_per_channel = jnp.sum(sse_rows.reshape(N, C), axis=0)   # (C,)

    if is_reduce_channel:
        mse = jnp.sum(sse_per_channel) / jnp.float32(N * C * H * W)
    else:
        mse = sse_per_channel / jnp.float32(N * H * W)
    return jnp.sqrt(mse)


if __name__ == "__main__":
    key = jax.random.PRNGKey(0)
    k_gt, k_pred = jax.random.split(key)

    N, C, H, W = 2, 4, 16, 16
    gt = jax.random.uniform(k_gt, (N, C, H, W), dtype=jnp.float32)
    pred = jax.random.uniform(k_pred, (N, C, H, W), dtype=jnp.float32)

    # is_reduce_channel=True -> scalar RMSE
    out_scalar = rmse(gt, pred, is_reduce_channel=True)
    out_scalar = jax.block_until_ready(out_scalar)

    # is_reduce_channel=False -> per-channel (C,) RMSE
    out_per_channel = rmse(gt, pred, is_reduce_channel=False)
    out_per_channel = jax.block_until_ready(out_per_channel)

    # Sanity check against a pure-JAX reference.
    ref_scalar = jnp.sqrt(jnp.mean((gt - pred) ** 2))
    ref_per_channel = jnp.sqrt(jnp.mean((gt - pred) ** 2, axis=(0, 2, 3)))
    assert jnp.allclose(out_scalar, ref_scalar, rtol=1e-5, atol=1e-6)
    assert jnp.allclose(out_per_channel, ref_per_channel, rtol=1e-5, atol=1e-6)

    print("KERNEL_OK")
</pallas_src>

<mosaic_0001>
module attributes {stable_mosaic.version = 11 : i64} {
  func.func @_sse_kernel(%arg0: i32, %arg1: i32, %arg2: memref<8x256xf32, #tpu.memory_space<vmem>>, %arg3: memref<8x256xf32, #tpu.memory_space<vmem>>, %arg4: memref<8x128xf32, #tpu.memory_space<vmem>>) attributes {dimension_semantics = [#tpu.dimension_semantics<parallel>, #tpu.dimension_semantics<arbitrary>], iteration_bounds = array<i64: 1, 1>, scalar_prefetch = 0 : i64, scratch_operands = 0 : i64, tpu.core_type = #tpu.core_type<tc>, window_params = [{transform_indices = @transform_0, window_bounds = array<i64: 8, 256>}, {transform_indices = @transform_1, window_bounds = array<i64: 8, 256>}, {transform_indices = @transform_2, window_bounds = array<i64: 8, 128>}]} {
    %c0_i32 = arith.constant 0 : i32
    %0 = arith.cmpi eq, %arg1, %c0_i32 : i32
    %1 = arith.extui %0 : i1 to i32
    %c0_i32_0 = arith.constant 0 : i32
    %2 = arith.cmpi ne, %1, %c0_i32_0 : i32
    scf.if %2 {
      %cst = arith.constant 0.000000e+00 : f32
      %13 = vector.broadcast %cst : f32 to vector<8x128xf32>
      %c0_8 = arith.constant 0 : index
      %c0_9 = arith.constant 0 : index
      %14 = vector.load %arg4[%c0_8, %c0_9] : memref<8x128xf32, #tpu.memory_space<vmem>>, vector<8x128xf32>
      tpu.vector_store %arg4[%c0_8, %c0_9], %13 {strides = array<i32>} : memref<8x128xf32, #tpu.memory_space<vmem>>, vector<8x128xf32>,
    } else {
    }
    %c0 = arith.constant 0 : index
    %c0_1 = arith.constant 0 : index
    %3 = vector.load %arg2[%c0, %c0_1] : memref<8x256xf32, #tpu.memory_space<vmem>>, vector<8x256xf32>
    %c0_2 = arith.constant 0 : index
    %c0_3 = arith.constant 0 : index
    %4 = vector.load %arg3[%c0_2, %c0_3] : memref<8x256xf32, #tpu.memory_space<vmem>>, vector<8x256xf32>
    %5 = arith.subf %3, %4 : vector<8x256xf32>
    %6 = arith.mulf %5, %5 : vector<8x256xf32>
    %7 = vector.extract_strided_slice %6 {offsets = [0, 0], sizes = [8, 128], strides = [1, 1]} : vector<8x256xf32> to vector<8x128xf32>
    %8 = vector.extract_strided_slice %6 {offsets = [0, 128], sizes = [8, 128], strides = [1, 1]} : vector<8x256xf32> to vector<8x128xf32>
    %9 = arith.addf %7, %8 : vector<8x128xf32>
    %c0_4 = arith.constant 0 : index
    %c0_5 = arith.constant 0 : index
    %10 = vector.load %arg4[%c0_4, %c0_5] : memref<8x128xf32, #tpu.memory_space<vmem>>, vector<8x128xf32>
    %11 = arith.addf %10, %9 : vector<8x128xf32>
    %c0_6 = arith.constant 0 : index
    %c0_7 = arith.constant 0 : index
    %12 = vector.load %arg4[%c0_6, %c0_7] : memref<8x128xf32, #tpu.memory_space<vmem>>, vector<8x128xf32>
    tpu.vector_store %arg4[%c0_6, %c0_7], %11 {strides = array<i32>} : memref<8x128xf32, #tpu.memory_space<vmem>>, vector<8x128xf32>,
    return
  }
  func.func @transform_0(%arg0: i32, %arg1: i32) -> (i32, i32) {
    %c0_i32 = arith.constant 0 : i32
    return %arg0, %arg1 : i32, i32
  }
  func.func @transform_1(%arg0: i32, %arg1: i32) -> (i32, i32) {
    %c0_i32 = arith.constant 0 : i32
    return %arg0, %arg1 : i32, i32
  }
  func.func @transform_2(%arg0: i32, %arg1: i32) -> (i32, i32) {
    %c0_i32 = arith.constant 0 : i32
    %c0_i32_0 = arith.constant 0 : i32
    return %arg0, %c0_i32 : i32, i32
  }
}

</mosaic_0001>

<bundles_post_ra>
// kernel: rmse.1
= control target key start
LH: loop header
LB: loop body
LE: loop exit
PB: predicated region body
PF: predicated region fallthrough
CT: control target
= control target key end

     0   :  { %s63_s0 = inlined_call_operand.vmem [shape: f32[8,256], index: 0, kind: input, shape index: {}]   ;;  %s64_s1 = inlined_call_operand.vmem [shape: f32[8,256], index: 1, kind: input, shape index: {}]   ;;  %s65_s2 = inlined_call_operand.vmem [shape: f32[8,128], index: 2, kind: output, shape index: {}]  }
   0x1   :  { %v16_v0 = vld [vmem:[%s63_s0] sm:$0xff]  ;;  %v17_v1 = vld [vmem:[%s63_s0 + $0x8] sm:$0xff] }
   0x2   :  { %v18_v2 = vld [vmem:[%s64_s1] sm:$0xff]  ;;  %v19_v3 = vld [vmem:[%s64_s1 + $0x8] sm:$0xff] }
   0x3   :  { %v20_v4 = vsub.f32 %v16_v0, %v18_v2  ;;  %v21_v5 = vsub.f32 %v17_v1, %v19_v3 }
   0x5   :  { %v22_v6 = vmul.f32 %v20_v4, %v20_v4  ;;  %v23_v7 = vmul.f32 %v21_v5, %v21_v5 }
   0x7   :  { %v24_v8 = vadd.f32 %v23_v7, %v22_v6 }
   0x9   :  { %27 = vst [vmem:[%s65_s2] sm:$0xff] %v24_v8 }

</bundles_post_ra>
